<compile_context>
chip_gen: v5e
topology: v5e:2x2
jax: 0.10.0
libtpu: 0.0.40
codegen_flags: <defaults>
</compile_context>

<pallas_src>
import functools

import numpy as np
import jax
import jax.numpy as jnp
from jax import lax
from jax.experimental import pallas as pl
from jax.experimental.pallas import tpu as pltpu

K = 4        # kernel size
STRIDE = 2
PAD = 1

# (output parity, offset into the 1-padded input) -> ConvTranspose2d kernel index.
# Same table applies to height (ph, dh -> kh) and width (pw, dw -> kw).
_TAP = {(0, 0): 3, (0, 1): 1, (1, 1): 2, (1, 2): 0}


# --------------------------------------------------------------------------- #
# Kernel: one grid step = nb batch elements, a single MXU matmul
#   (nb*Hh, 3*Cin*(Wh+2)) @ (3*Cin*(Wh+2), 2*Wh*2*Cout)   bf16 -> f32 acc
# --------------------------------------------------------------------------- #
def _upconv_kernel(x_ref, w_ref, b_ref, o_ref):
    """x_ref: (1, M, Kdim) bf16 im2col rows; w_ref: (Kdim, Ndim) bf16 banded weight;
    b_ref: (1, Ndim) f32 tiled bias; o_ref: (1, M, Ndim) f32."""
    acc = jnp.dot(x_ref[0], w_ref[...], preferred_element_type=jnp.float32)
    o_ref[0] = (acc + b_ref[...]).astype(o_ref.dtype)


# --------------------------------------------------------------------------- #
# Host-side (numpy) banded-weight construction — done once per (weight, Wh).
# --------------------------------------------------------------------------- #
def _build_banded_weight(weight, wh, cin, cout):
    """(Cin, Cout, 4, 4) ConvTranspose2d weight -> (3*Cin*(Wh+2), 2*Wh*2*Cout).

    K axis order = (dh, Cin, Wh+2)  (matches the im2col row layout),
    N axis order = (ph, J, pw, Cout) (lane-dense output layout).
    """
    wbig = np.zeros((3, cin, wh + 2, 2, wh, 2, cout), np.float32)
    js = np.arange(wh)
    for dh in range(3):
        for ph in range(2):
            kh = _TAP.get((ph, dh))
            if kh is None:
                continue
            for dw in range(3):
                for pw in range(2):
                    kw = _TAP.get((pw, dw))
                    if kw is None:
                        continue
                    tap = weight[:, :, kh, kw]                     # (Cin, Cout)
                    wbig[dh, :, js + dw, ph, js, pw, :] = np.broadcast_to(
                        tap, (wh, cin, cout))
    return wbig.reshape(3 * cin * (wh + 2), 2 * wh * 2 * cout)


def _pick_batch_block(n, hh, target_m=256):
    """Batch elements folded into each grid step's MXU M axis.

    Prefer >=2 grid blocks (v7x: keep both TensorCores busy) and, within that,
    the largest block whose M stays <= target (v5e/v6e: fewer, fatter steps)."""
    nb_cap = max(1, target_m // max(hh, 1))
    divisors = [d for d in range(1, n + 1) if n % d == 0]
    two_block = [d for d in divisors if d <= nb_cap and n // d >= 2]
    if two_block:
        return max(two_block)
    capped = [d for d in divisors if d <= nb_cap]
    return max(capped) if capped else 1


# --------------------------------------------------------------------------- #
# Jitted device-side forward: glue + pallas_call + output unpacking fused.
# --------------------------------------------------------------------------- #
@functools.partial(jax.jit, static_argnames=("ho", "wo", "op_h", "op_w", "nb"))
def _up_split_jit(x_nchw, w_big, b_big, *, ho, wo, op_h, op_w, nb):
    n, cin, h, w = x_nchw.shape
    hh, wh = h + op_h, w + op_w                 # half-resolution output extent
    kdim = cin * (wh + 2)                       # per-row lane size
    kdim3 = 3 * kdim                            # full contraction size
    ndim = b_big.shape[-1]                      # 2*Wh*2*Cout
    cout = ndim // (4 * wh)
    m_blk = nb * hh

    # glue: (N,C,H,W) -> (N,H,C,W) (minor dim stays minor), halo pad, flatten lanes.
    x_t = jnp.transpose(x_nchw, (0, 2, 1, 3))
    x_p = jnp.pad(x_t, ((0, 0), (1, 1 + op_h), (0, 0), (1, 1 + op_w)))
    x_rows = x_p.reshape(n, hh + 2, kdim).astype(w_big.dtype)
    # im2col over the 3 input-row offsets -> single K = 3*kdim contraction.
    x_mat = jnp.concatenate(
        [x_rows[:, 0:hh], x_rows[:, 1:hh + 1], x_rows[:, 2:hh + 2]], axis=-1)
    # Fold nb batch elements into the MXU M axis (leading-dim reshape, free in HBM).
    x_mat = x_mat.reshape(n // nb, m_blk, kdim3)

    itemsize = jnp.dtype(w_big.dtype).itemsize
    flops = 2 * n * hh * kdim3 * ndim
    bytes_accessed = (n * hh * kdim3 * itemsize      # x im2col
                      + kdim3 * ndim * itemsize      # banded weight
                      + ndim * 4                     # bias
                      + n * hh * ndim * 4)           # output (f32)

    # VMEM budget: x/out double-buffered, weight + bias resident.
    vmem_est = (2 * m_blk * kdim3 * itemsize
                + kdim3 * ndim * itemsize
                + ndim * 4
                + 2 * m_blk * ndim * 4)
    cparams = dict(dimension_semantics=("parallel",))
    if vmem_est > 32 * 1024 * 1024:
        cparams["vmem_limit_bytes"] = int(vmem_est * 1.25)

    out_half = pl.pallas_call(
        _upconv_kernel,
        out_shape=jax.ShapeDtypeStruct((n // nb, m_blk, ndim), jnp.float32),
        grid_spec=pltpu.PrefetchScalarGridSpec(
            num_scalar_prefetch=0,
            grid=(n // nb,),
            in_specs=[
                pl.BlockSpec((1, m_blk, kdim3), lambda b: (b, 0, 0)),
                pl.BlockSpec((kdim3, ndim), lambda b: (0, 0)),
                pl.BlockSpec((1, ndim), lambda b: (0, 0)),
            ],
            out_specs=pl.BlockSpec((1, m_blk, ndim), lambda b: (b, 0, 0)),
        ),
        compiler_params=pltpu.CompilerParams(**cparams),
        cost_estimate=pl.CostEstimate(flops=flops, transcendentals=0,
                                      bytes_accessed=bytes_accessed),
    )(x_mat, w_big, b_big)

    # (ph, J, pw, co) lanes -> interleave height phases, trim the output_padding
    # extras, view as NHWC (pure reshapes of the lane axis).
    out_rows = out_half.reshape(n, 2 * hh, 2 * wh * cout)[:, :ho, :wo * cout]
    out_nhwc = out_rows.reshape(n, ho, wo, cout)
    # TODO(synk): skip this relayout when the consumer accepts NHWC.
    return jnp.transpose(out_nhwc, (0, 3, 1, 2))                  # back to NCHW


# --------------------------------------------------------------------------- #
# Module analogue: holds weights, caches banded params per Wh.
# --------------------------------------------------------------------------- #
class UpSplit:
    """Pallas TPU equivalent of `upSplit` (ConvTranspose2d(in_ch, out_ch, 4, 2, 1))."""

    def __init__(self, weight, bias, compute_dtype=jnp.bfloat16):
        self._weight = np.asarray(weight, np.float32)   # (Cin, Cout, 4, 4)
        self._bias = np.asarray(bias, np.float32)       # (Cout,)
        self._cin, self._cout = self._weight.shape[0], self._weight.shape[1]
        self._compute_dtype = jnp.dtype(compute_dtype)
        self._param_cache = {}                          # wh -> (w_big, b_big)

    def _banded_params(self, wh):
        if wh not in self._param_cache:
            w_big = _build_banded_weight(self._weight, wh, self._cin, self._cout)
            b_big = np.tile(self._bias, 2 * wh * 2).reshape(1, -1)
            self._param_cache[wh] = (
                jnp.asarray(w_big, dtype=self._compute_dtype),
                jnp.asarray(b_big, dtype=jnp.float32))
        return self._param_cache[wh]

    def __call__(self, x_nchw, output_size):
        n, cin, h, w = x_nchw.shape
        assert cin == self._cin, "channel mismatch"
        ho, wo = int(output_size[0]), int(output_size[1])

        # output_padding implied by requested output_size (PyTorch semantics).
        base_ho = (h - 1) * STRIDE - 2 * PAD + K
        base_wo = (w - 1) * STRIDE - 2 * PAD + K
        op_h, op_w = ho - base_ho, wo - base_wo
        assert 0 <= op_h < STRIDE and 0 <= op_w < STRIDE, "invalid output_size"

        hh, wh = h + op_h, w + op_w
        w_bytes = (3 * cin * (wh + 2)) * (4 * wh * self._cout) * self._compute_dtype.itemsize
        if w_bytes > 24 * 1024 * 1024:
            # TODO(synk): per-phase channel-contraction form for large Wh*Cin*Cout
            # (banded weight would blow the v7x 64 MiB VMEM / 32 MiB scoped default).
            raise NotImplementedError("banded weight too large for resident VMEM")

        nb = _pick_batch_block(n, hh)
        w_big, b_big = self._banded_params(wh)
        return _up_split_jit(x_nchw, w_big, b_big,
                             ho=ho, wo=wo, op_h=op_h, op_w=op_w, nb=nb)


# --------------------------------------------------------------------------- #
# Pure-JAX reference (lhs-dilated conv == conv transpose).
# --------------------------------------------------------------------------- #
def _reference(x_nchw, weight, bias, output_size):
    ho, wo = int(output_size[0]), int(output_size[1])
    h, w = x_nchw.shape[2], x_nchw.shape[3]
    op_h = ho - ((h - 1) * STRIDE - 2 * PAD + K)
    op_w = wo - ((w - 1) * STRIDE - 2 * PAD + K)
    w_conv = jnp.transpose(weight, (1, 0, 2, 3))[:, :, ::-1, ::-1]  # OIHW, flipped
    pe = K - 1 - PAD
    out = lax.conv_general_dilated(
        x_nchw, w_conv, window_strides=(1, 1),
        padding=((pe, pe + op_h), (pe, pe + op_w)),
        lhs_dilation=(STRIDE, STRIDE),
        dimension_numbers=("NCHW", "OIHW", "NCHW"))
    return out + bias.reshape(1, -1, 1, 1)


if __name__ == "__main__":
    key = jax.random.PRNGKey(0)
    k_x, k_w, k_b = jax.random.split(key, 3)

    N, IN_CH, OUT_CH, H, W = 2, 8, 4, 16, 16
    x = jax.random.normal(k_x, (N, IN_CH, H, W), jnp.float32)
    # ConvTranspose2d weight shape: (in_ch, out_ch, K, K)
    weight = jax.random.normal(k_w, (IN_CH, OUT_CH, K, K), jnp.float32) * 0.1
    bias = jax.random.normal(k_b, (OUT_CH,), jnp.float32) * 0.1

    up = UpSplit(weight, bias)                 # weights hoisted/prepared once

    # output_padding = 0 and output_padding = 1 paths
    for output_size in [(2 * H, 2 * W), (2 * H + 1, 2 * W + 1)]:
        out = jax.block_until_ready(up(x, output_size))
        ref = _reference(x, weight, bias, output_size)
        assert out.shape == (N, OUT_CH, output_size[0], output_size[1]), out.shape
        # bf16 MXU inputs with fp32 accumulation -> looser tolerance than f32.
        assert jnp.allclose(out, ref, atol=3e-2, rtol=3e-2), \
            f"mismatch vs reference for output_size={output_size}"

    print("KERNEL_OK")
</pallas_src>

<mosaic_0001>
module attributes {stable_mosaic.version = 11 : i64} {
  func.func @_upconv_kernel(%arg0: i32, %arg1: memref<1x16x432xbf16, #tpu.memory_space<vmem>>, %arg2: memref<432x256xbf16, #tpu.memory_space<vmem>>, %arg3: memref<1x256xf32, #tpu.memory_space<vmem>>, %arg4: memref<1x16x256xf32, #tpu.memory_space<vmem>>) attributes {dimension_semantics = [#tpu.dimension_semantics<parallel>], iteration_bounds = array<i64: 2>, scalar_prefetch = 0 : i64, scratch_operands = 0 : i64, tpu.core_type = #tpu.core_type<tc>, window_params = [{transform_indices = @transform_0, window_bounds = array<i64: 1, 16, 432>}, {pipeline_mode = #tpu.pipeline_mode<synchronous>, transform_indices = @transform_1, window_bounds = array<i64: 432, 256>}, {pipeline_mode = #tpu.pipeline_mode<synchronous>, transform_indices = @transform_2, window_bounds = array<i64: 1, 256>}, {transform_indices = @transform_3, window_bounds = array<i64: 1, 16, 256>}]} {
    %c0 = arith.constant 0 : index
    %c0_0 = arith.constant 0 : index
    %c0_1 = arith.constant 0 : index
    %0 = vector.load %arg1[%c0, %c0_0, %c0_1] : memref<1x16x432xbf16, #tpu.memory_space<vmem>>, vector<1x16x432xbf16>
    %1 = vector.shape_cast %0 : vector<1x16x432xbf16> to vector<16x432xbf16>
    %c0_2 = arith.constant 0 : index
    %c0_3 = arith.constant 0 : index
    %2 = vector.load %arg2[%c0_2, %c0_3] : memref<432x256xbf16, #tpu.memory_space<vmem>>, vector<432x256xbf16>
    %cst = arith.constant dense<0.000000e+00> : vector<16x256xf32>
    %3 = tpu.matmul %1, %2, %cst {dimension_numbers = #tpu.dot_dimension_numbers<[1], [0], [0], [1], [0, 0, 1, 1], [], []>} : vector<16x432xbf16>, vector<432x256xbf16>, vector<16x256xf32> -> vector<16x256xf32>
    %c0_4 = arith.constant 0 : index
    %c0_5 = arith.constant 0 : index
    %4 = vector.load %arg3[%c0_4, %c0_5] : memref<1x256xf32, #tpu.memory_space<vmem>>, vector<1x256xf32>
    %5 = vector.broadcast %4 : vector<1x256xf32> to vector<16x256xf32>
    %6 = arith.addf %3, %5 : vector<16x256xf32>
    %c0_6 = arith.constant 0 : index
    %c0_7 = arith.constant 0 : index
    %c0_8 = arith.constant 0 : index
    %7 = vector.load %arg4[%c0_6, %c0_7, %c0_8] : memref<1x16x256xf32, #tpu.memory_space<vmem>>, vector<1x16x256xf32>
    %8 = vector.shape_cast %7 : vector<1x16x256xf32> to vector<16x256xf32>
    %9 = vector.shape_cast %6 : vector<16x256xf32> to vector<1x16x256xf32>
    tpu.vector_store %arg4[%c0_6, %c0_7, %c0_8], %9 {strides = array<i32>} : memref<1x16x256xf32, #tpu.memory_space<vmem>>, vector<1x16x256xf32>,
    return
  }
  func.func @transform_0(%arg0: i32) -> (i32, i32, i32) {
    %c0_i32 = arith.constant 0 : i32
    %c0_i32_0 = arith.constant 0 : i32
    %c0_i32_1 = arith.constant 0 : i32
    return %arg0, %c0_i32, %c0_i32_0 : i32, i32, i32
  }
  func.func @transform_1(%arg0: i32) -> (i32, i32) {
    %c0_i32 = arith.constant 0 : i32
    %c0_i32_0 = arith.constant 0 : i32
    %c0_i32_1 = arith.constant 0 : i32
    return %c0_i32, %c0_i32_0 : i32, i32
  }
  func.func @transform_2(%arg0: i32) -> (i32, i32) {
    %c0_i32 = arith.constant 0 : i32
    %c0_i32_0 = arith.constant 0 : i32
    %c0_i32_1 = arith.constant 0 : i32
    return %c0_i32, %c0_i32_0 : i32, i32
  }
  func.func @transform_3(%arg0: i32) -> (i32, i32, i32) {
    %c0_i32 = arith.constant 0 : i32
    %c0_i32_0 = arith.constant 0 : i32
    %c0_i32_1 = arith.constant 0 : i32
    return %arg0, %c0_i32, %c0_i32_0 : i32, i32, i32
  }
}

</mosaic_0001>

<bundles_post_ra>
// kernel: _up_split_jit.1
= control target key start
LH: loop header
LB: loop body
LE: loop exit
PB: predicated region body
PF: predicated region fallthrough
CT: control target
= control target key end

     0   :  { %s1041_s12 = smov 0   ;;  %s1414_s0 = inlined_call_operand.vmem [shape: bf16[2,16,432], index: 0, kind: input, shape index: {}]   ;;  %s1415_s1 = inlined_call_operand.vmem [shape: bf16[432,256], index: 1, kind: input, shape index: {}]   ;;  %s1416_s2 = inlined_call_operand.vmem [shape: f32[1,256], index: 2, kind: input, shape index: {}]   ;;  %s1417_s3 = inlined_call_operand.vmem [shape: f32[2,16,256], index: 3, kind: output, shape index: {}]  }
   0x1 LB: > { %s700_s13 = sadd.s32 4294967295, %s1019_s12   ;;  %p704_p0 = scmp.ge.s32.totalorder %s1019_s12, 1  ;;  %s1019_s12 = sphi %s1041_s12, %s13_s12  }
   0x2   : > { %p137_p1 = scmp.lt.s32.totalorder %s1019_s12, 3 }
   0x4   : > { %p138_p2 = pnand %p704_p0, %p137_p1 }
   0x5   : > { %p161_p3 = scmp.lt.s32.totalorder (!%p138_p2), %s700_s13, 1 }
   0x6   : > { %141 = sbr.rel (%p138_p2) target bundleno = 218 (0xda), region = 32 }
   0xb   : > { %v783_v0 = vld [vmem:[%s1415_s1 + $0x70] sm:$0xf]  ;;  %v966_v1 = vld [vmem:[%s1415_s1 + $0x74] sm:$0xf0]  ;;  %v775_v9 = vld [vmem:[%s1415_s1 + $0x60] sm:$0xf] }
   0xc   : > { %v847_v2 = vld [vmem:[%s1415_s1 + $0xf0] sm:$0xf]  ;;  %v784_v3 = vor.u32 %v966_v1, %v783_v0  ;;  %v982_v4 = vld [vmem:[%s1415_s1 + $0xf4] sm:$0xf0]  ;;  %v964_v10 = vld [vmem:[%s1415_s1 + $0x64] sm:$0xf0] }
   0xd   : > { %v911_v5 = vld [vmem:[%s1415_s1 + $0x170] sm:$0xf]  ;;  %v998_v6 = vld [vmem:[%s1415_s1 + $0x174] sm:$0xf0]  ;;  %v848_v7 = vor.u32 %v982_v4, %v847_v2  ;;  %v839_v11 = vld [vmem:[%s1415_s1 + $0xe0] sm:$0xf]  ;;  %v776_v12 = vor.u32 %v964_v10, %v775_v9 }
   0xe   : > { %v912_v8 = vor.u32 %v998_v6, %v911_v5  ;;  %529 = vmatpush.bf16.msra.mxu0 %v784_v3  ;;  %v980_v13 = vld [vmem:[%s1415_s1 + $0xe4] sm:$0xf0]  ;;  %v903_v14 = vld [vmem:[%s1415_s1 + $0x160] sm:$0xf]  ;;  %v767_v20 = vld [vmem:[%s1415_s1 + $0x50] sm:$0xf] }
   0xf   : > { %v996_v15 = vld [vmem:[%s1415_s1 + $0x164] sm:$0xf0]  ;;  %543 = vmatpush.bf16.msra.mxu1 %v848_v7  ;;  %v840_v16 = vor.u32 %v980_v13, %v839_v11  ;;  %v935_v18 = vld [vmem:[%s1415_s1 + $0x1a0] sm:$0xf]  ;;  %v962_v22 = vld [vmem:[%s1415_s1 + $0x54] sm:$0xf0] }
  0x10   : > { %557 = vmatpush.bf16.msra.mxu2 %v912_v8  ;;  %v904_v17 = vor.u32 %v996_v15, %v903_v14  ;;  %v1004_v19 = vld [vmem:[%s1415_s1 + $0x1a4] sm:$0xf0]  ;;  %v831_v23 = vld [vmem:[%s1415_s1 + $0xd0] sm:$0xf]  ;;  %v978_v24 = vld [vmem:[%s1415_s1 + $0xd4] sm:$0xf0]  ;;  %v768_v28 = vor.u32 %v962_v22, %v767_v20 }
  0x11   : > { %v936_v21 = vor.u32 %v1004_v19, %v935_v18  ;;  %v895_v25 = vld [vmem:[%s1415_s1 + $0x150] sm:$0xf]  ;;  %v994_v26 = vld [vmem:[%s1415_s1 + $0x154] sm:$0xf0]  ;;  %v759_v30 = vld [vmem:[%s1415_s1 + $0x40] sm:$0xf]  ;;  %v832_v32 = vor.u32 %v978_v24, %v831_v23 }
  0x12   : > { %v927_v27 = vld [vmem:[%s1415_s1 + $0x190] sm:$0xf]  ;;  %530 = vmatpush.bf16.msra.mxu0 %v776_v12  ;;  %v1002_v29 = vld [vmem:[%s1415_s1 + $0x194] sm:$0xf0]  ;;  %v960_v31 = vld [vmem:[%s1415_s1 + $0x44] sm:$0xf0]  ;;  %v896_v33 = vor.u32 %v994_v26, %v895_v25 }
  0x13   : > { %576 = vmatpush.bf16.msra.mxu3 %v936_v21  ;;  %544 = vmatpush.bf16.msra.mxu1 %v840_v16  ;;  %v928_v34 = vor.u32 %v1002_v29, %v927_v27  ;;  %v823_v35 = vld [vmem:[%s1415_s1 + $0xc0] sm:$0xf]  ;;  %v976_v36 = vld [vmem:[%s1415_s1 + $0xc4] sm:$0xf0]  ;;  %v965_v41 = vld [vmem:[%s1415_s1 + $0x74] sm:$0xf]  ;;  %v760_v43 = vor.u32 %v960_v31, %v759_v30 }
  0x14   : > { %558 = vmatpush.bf16.msra.mxu2 %v904_v17  ;;  %v887_v37 = vld [vmem:[%s1415_s1 + $0x140] sm:$0xf]  ;;  %v992_v38 = vld [vmem:[%s1415_s1 + $0x144] sm:$0xf0]  ;;  %v785_v42 = vld [vmem:[%s1415_s1 + $0x78] sm:$0xf0]  ;;  %v824_v45 = vor.u32 %v976_v36, %v823_v35 }
  0x15   : > { %v919_v39 = vld [vmem:[%s1415_s1 + $0x180] sm:$0xf]  ;;  %v1000_v40 = vld [vmem:[%s1415_s1 + $0x184] sm:$0xf0]  ;;  %v888_v46 = vor.u32 %v992_v38, %v887_v37  ;;  %v751_v47 = vld [vmem:[%s1415_s1 + $0x30] sm:$0xf]  ;;  %v788_v50 = vor.u32 %v965_v41, %v785_v42 }
  0x16   : > { %531 = vmatpush.bf16.msra.mxu0 %v768_v28  ;;  %v920_v44 = vor.u32 %v1000_v40, %v919_v39  ;;  %v958_v48 = vld [vmem:[%s1415_s1 + $0x34] sm:$0xf0]  ;;  %v815_v49 = vld [vmem:[%s1415_s1 + $0xb0] sm:$0xf]  ;;  %v963_v54 = vld [vmem:[%s1415_s1 + $0x64] sm:$0xf] }
  0x17   : > { %577 = vmatpush.bf16.msra.mxu3 %v928_v34  ;;  %545 = vmatpush.bf16.msra.mxu1 %v832_v32  ;;  %v974_v51 = vld [vmem:[%s1415_s1 + $0xb4] sm:$0xf0]  ;;  %v879_v52 = vld [vmem:[%s1415_s1 + $0x130] sm:$0xf]  ;;  %v777_v55 = vld [vmem:[%s1415_s1 + $0x68] sm:$0xf0]  ;;  %v752_v56 = vor.u32 %v958_v48, %v751_v47 }
  0x18   : > { %559 = vmatpush.bf16.msra.mxu2 %v896_v33  ;;  %v990_v53 = vld [vmem:[%s1415_s1 + $0x134] sm:$0xf0]  ;;  %v816_v57 = vor.u32 %v974_v51, %v815_v49  ;;  %v743_v59 = vld [vmem:[%s1415_s1 + $0x20] sm:$0xf]  ;;  %v956_v60 = vld [vmem:[%s1415_s1 + $0x24] sm:$0xf0]  ;;  %v780_v62 = vor.u32 %v963_v54, %v777_v55 }
  0x19   : > { %v880_v58 = vor.u32 %v990_v53, %v879_v52  ;;  %v807_v61 = vld [vmem:[%s1415_s1 + $0xa0] sm:$0xf]  ;;  %v972_v63 = vld [vmem:[%s1415_s1 + $0xa4] sm:$0xf0]  ;;  %v961_v2 = vld [vmem:[%s1415_s1 + $0x54] sm:$0xf]  ;;  %v744_v4 = vor.u32 %v956_v60, %v743_v59 }
  0x1a   : > { %532 = vmatpush.bf16.msra.mxu0 %v760_v43  ;;  %v871_v0 = vld [vmem:[%s1415_s1 + $0x120] sm:$0xf]  ;;  %v988_v1 = vld [vmem:[%s1415_s1 + $0x124] sm:$0xf0]  ;;  %v769_v3 = vld [vmem:[%s1415_s1 + $0x58] sm:$0xf0]  ;;  %v808_v8 = vor.u32 %v972_v63, %v807_v61 }
  0x1b   : > { %578 = vmatpush.bf16.msra.mxu3 %v920_v44  ;;  %546 = vmatpush.bf16.msra.mxu1 %v824_v45  ;;  %v735_v5 = vld [vmem:[%s1415_s1 + $0x10] sm:$0xf]  ;;  %v954_v6 = vld [vmem:[%s1415_s1 + $0x14] sm:$0xf0]  ;;  %v872_v9 = vor.u32 %v988_v1, %v871_v0  ;;  %v772_v12 = vor.u32 %v961_v2, %v769_v3  ;;  %v959_v14 = vld [vmem:[%s1415_s1 + $0x44] sm:$0xf] }
  0x1c   : > { %560 = vmatpush.bf16.msra.mxu2 %v888_v46  ;;  %v799_v7 = vld [vmem:[%s1415_s1 + $0x90] sm:$0xf]  ;;  %v970_v10 = vld [vmem:[%s1415_s1 + $0x94] sm:$0xf0]  ;;  %v761_v15 = vld [vmem:[%s1415_s1 + $0x48] sm:$0xf0]  ;;  %v736_v18 = vor.u32 %v954_v6, %v735_v5 }
  0x1d   : > { %v863_v11 = vld [vmem:[%s1415_s1 + $0x110] sm:$0xf]  ;;  %v986_v13 = vld [vmem:[%s1415_s1 + $0x114] sm:$0xf0]  ;;  %v727_v16 = vld [vmem:[%s1415_s1] sm:$0xf]  ;;  %v800_v23 = vor.u32 %v970_v10, %v799_v7  ;;  %v764_v27 = vor.u32 %v959_v14, %v761_v15 }
  0x1e   : > { %533 = vmatpush.bf16.msra.mxu0 %v752_v56  ;;  %v952_v17 = vld [vmem:[%s1415_s1 + $0x4] sm:$0xf0]  ;;  %s1419_s13 = smov (!%p161_p3, %s700_s13), 1  ;;  %v791_v19 = vld [vmem:[%s1415_s1 + $0x80] sm:$0xf]  ;;  %v864_v24 = vor.u32 %v986_v13, %v863_v11  ;;  %vm525_vm0 = vcmask 392192  }
  0x1f   : > { %585 = vmatpush.bf16.msrb.mxu3 %v788_v50  ;;  %547 = vmatpush.bf16.msra.mxu1 %v816_v57  ;;  %v968_v20 = vld [vmem:[%s1415_s1 + $0x84] sm:$0xf0]  ;;  %v855_v21 = vld [vmem:[%s1415_s1 + $0x100] sm:$0xf]  ;;  %s945_s11 = sshll.u32 %s1419_s13, 5  ;;  %v728_v34 = vor.u32 %v952_v17, %v727_v16 }
  0x20   : > { %561 = vmatpush.bf16.msra.mxu2 %v880_v58  ;;  %v984_v22 = vld [vmem:[%s1415_s1 + $0x104] sm:$0xf0]  ;;  %v957_v25 = vld [vmem:[%s1415_s1 + $0x34] sm:$0xf]  ;;  %v753_v26 = vld [vmem:[%s1415_s1 + $0x38] sm:$0xf0]  ;;  %s165_s20 = scalar_lea.vmem %s1414_s0, %s945_s11  ;;  %v792_v39 = vor.u32 %v968_v20, %v791_v19  ;;  %s170_s17 = scalar_lea.vmem %s1417_s3, %s945_s11 }
  0x21   : > { %v981_v28 = vld [vmem:[%s1415_s1 + $0xf4] sm:$0xf]  ;;  %v849_v29 = vld [vmem:[%s1415_s1 + $0xf8] sm:$0xf0]  ;;  %v948_v31 = vld [vmem:[%s165_s20 + $0xc] sm:$0xf]  ;;  %v856_v40 = vor.u32 %v984_v22, %v855_v21  ;;  %v756_v44 = vor.u32 %v957_v25, %v753_v26 }
  0x22   : > { %534 = vmatpush.bf16.msra.mxu0 %v744_v4  ;;  %v997_v30 = vld [vmem:[%s1415_s1 + $0x174] sm:$0xf]  ;;  %v721_v32 = vld [vmem:[%s165_s20 + $0x18] sm:$0xf0]  ;;  %v719_v36 = vld [vmem:[%s165_s20 + $0x8] sm:$0xf]  ;;  %v852_v45 = vor.u32 %v981_v28, %v849_v29 }
  0x23   : > { %586 = vmatpush.bf16.msrb.mxu3 %v780_v62  ;;  %548 = vmatpush.bf16.msra.mxu1 %v808_v8  ;;  %v913_v33 = vld [vmem:[%s1415_s1 + $0x178] sm:$0xf0]  ;;  %v1265_v35 = vor.u32 %v948_v31, %v721_v32  ;;  %v711_v37 = vld [vmem:[%s165_s20] sm:$0xf]  ;;  %v949_v38 = vld [vmem:[%s165_s20 + $0xc] sm:$0xf0] }
  0x24   : > { %562 = vmatpush.bf16.msra.mxu2 %v872_v9  ;;  %v950_v41 = vld [vmem:[%s165_s20 + $0x14] sm:$0xf0]  ;;  %v947_v42 = vld [vmem:[%s165_s20 + $0x4] sm:$0xf]  ;;  %v713_v43 = vld [vmem:[%s165_s20 + $0x10] sm:$0xf0]  ;;  %v916_v49 = vor.u32 %v997_v30, %v913_v33  ;;  %v1278_v50 = vor.u32 %v949_v38, %v711_v37 }
  0x25   : > { %v955_v46 = vld [vmem:[%s1415_s1 + $0x24] sm:$0xf]  ;;  %v745_v47 = vld [vmem:[%s1415_s1 + $0x28] sm:$0xf0]  ;;  %941 = vmatmul.msk.bf16.vlgmr.msra.gmra.mxu3 %vm525_vm0, %v1265_v35  ;;  %v1289_v54 = vor.u32 %v950_v41, %v719_v36  ;;  %v1297_v57 = vor.u32 %v947_v42, %v713_v43  ;;  %v953_v61 = vld [vmem:[%s1415_s1 + $0x14] sm:$0xf] }
  0x26   : > { %535 = vmatpush.bf16.msra.mxu0 %v736_v18  ;;  %v979_v48 = vld [vmem:[%s1415_s1 + $0xe4] sm:$0xf]  ;;  %v841_v51 = vld [vmem:[%s1415_s1 + $0xe8] sm:$0xf0]  ;;  %v748_v59 = vor.u32 %v955_v46, %v745_v47  ;;  %v1001_v62 = vld [vmem:[%s1415_s1 + $0x194] sm:$0xf] }
  0x27   : > { %587 = vmatpush.bf16.msrb.mxu3 %v772_v12  ;;  %549 = vmatpush.bf16.msra.mxu1 %v800_v23  ;;  %v1003_v52 = vld [vmem:[%s1415_s1 + $0x1a4] sm:$0xf]  ;;  %v937_v53 = vld [vmem:[%s1415_s1 + $0x1a8] sm:$0xf0]  ;;  %v844_v60 = vor.u32 %v979_v48, %v841_v51  ;;  %v929_v63 = vld [vmem:[%s1415_s1 + $0x198] sm:$0xf0] }
  0x28   : > { %563 = vmatpush.bf16.msra.mxu2 %v864_v24  ;;  %v995_v55 = vld [vmem:[%s1415_s1 + $0x164] sm:$0xf]  ;;  %v905_v56 = vld [vmem:[%s1415_s1 + $0x168] sm:$0xf0]  ;;  %v940_v58 = vor.u32 %v1003_v52, %v937_v53  ;;  %v737_v1 = vld [vmem:[%s1415_s1 + $0x18] sm:$0xf0]  ;;  %v932_v6 = vor.u32 %v1001_v62, %v929_v63 }
  0x29   : > { %v908_v0 = vor.u32 %v995_v55, %v905_v56  ;;  %v977_v2 = vld [vmem:[%s1415_s1 + $0xd4] sm:$0xf]  ;;  %v833_v3 = vld [vmem:[%s1415_s1 + $0xd8] sm:$0xf0]  ;;  %v740_v7 = vor.u32 %v953_v61, %v737_v1  ;;  %v951_v9 = vld [vmem:[%s1415_s1 + $0x4] sm:$0xf] }
  0x2a   : > { %536 = vmatpush.bf16.msra.mxu0 %v728_v34  ;;  %v993_v4 = vld [vmem:[%s1415_s1 + $0x154] sm:$0xf]  ;;  %v897_v5 = vld [vmem:[%s1415_s1 + $0x158] sm:$0xf0]  ;;  %v836_v8 = vor.u32 %v977_v2, %v833_v3  ;;  %v999_v10 = vld [vmem:[%s1415_s1 + $0x184] sm:$0xf] }
  0x2b   : > { %588 = vmatpush.bf16.msrb.mxu3 %v764_v27  ;;  %550 = vmatpush.bf16.msra.mxu1 %v792_v39  ;;  %v921_v11 = vld [vmem:[%s1415_s1 + $0x188] sm:$0xf0]  ;;  %v900_v12 = vor.u32 %v993_v4, %v897_v5  ;;  %v975_v14 = vld [vmem:[%s1415_s1 + $0xc4] sm:$0xf]  ;;  %v973_v22 = vld [vmem:[%s1415_s1 + $0xb4] sm:$0xf] }
  0x2c   : > { %564 = vmatpush.bf16.msra.mxu2 %v856_v40  ;;  %v729_v13 = vld [vmem:[%s1415_s1 + $0x8] sm:$0xf0]  ;;  %v991_v16 = vld [vmem:[%s1415_s1 + $0x144] sm:$0xf]  ;;  %v924_v18 = vor.u32 %v999_v10, %v921_v11  ;;  %v817_v23 = vld [vmem:[%s1415_s1 + $0xb8] sm:$0xf0] }
  0x2d   : > { %537 = vmatmul.bf16.vlgmr.msra.gmra.mxu0 %v1278_v50  ;;  %v825_v15 = vld [vmem:[%s1415_s1 + $0xc8] sm:$0xf0]  ;;  %v732_v19 = vor.u32 %v951_v9, %v729_v13  ;;  %v989_v24 = vld [vmem:[%s1415_s1 + $0x134] sm:$0xf]  ;;  %v881_v25 = vld [vmem:[%s1415_s1 + $0x138] sm:$0xf0]  ;;  %v820_v26 = vor.u32 %v973_v22, %v817_v23 }
  0x2e   : > { %599 = vmatpush.bf16.msrb.mxu0 %v852_v45  ;;  %551 = vmatmul.bf16.vlgmr.msra.gmra.mxu1 %v1297_v57  ;;  %v889_v17 = vld [vmem:[%s1415_s1 + $0x148] sm:$0xf0]  ;;  %v828_v20 = vor.u32 %v975_v14, %v825_v15  ;;  %v884_v27 = vor.u32 %v989_v24, %v881_v25  ;;  %v971_v28 = vld [vmem:[%s1415_s1 + $0xa4] sm:$0xf]  ;;  %v969_v34 = vld [vmem:[%s1415_s1 + $0x94] sm:$0xf] }
  0x2f   : > { %589 = vmatpush.bf16.msrb.mxu3 %v756_v44  ;;  %613 = vmatpush.bf16.msrb.mxu1 %v916_v49  ;;  %v892_v21 = vor.u32 %v991_v16, %v889_v17  ;;  %v809_v29 = vld [vmem:[%s1415_s1 + $0xa8] sm:$0xf0]  ;;  %v987_v30 = vld [vmem:[%s1415_s1 + $0x124] sm:$0xf]  ;;  %v801_v36 = vld [vmem:[%s1415_s1 + $0x98] sm:$0xf0] }
  0x30   : > { %565 = vmatmul.bf16.vlgmr.msra.gmra.mxu2 %v1289_v54  ;;  %v873_v31 = vld [vmem:[%s1415_s1 + $0x128] sm:$0xf0]  ;;  %v812_v32 = vor.u32 %v971_v28, %v809_v29  ;;  %v985_v37 = vld [vmem:[%s1415_s1 + $0x114] sm:$0xf]  ;;  %v865_v38 = vld [vmem:[%s1415_s1 + $0x118] sm:$0xf0]  ;;  %v804_v39 = vor.u32 %v969_v34, %v801_v36 }
  0x31   : > { %632 = vmatpush.bf16.msrb.mxu2 %v940_v58  ;;  %v876_v33 = vor.u32 %v987_v30, %v873_v31  ;;  %v868_v40 = vor.u32 %v985_v37, %v865_v38  ;;  %v967_v41 = vld [vmem:[%s1415_s1 + $0x84] sm:$0xf]  ;;  %v857_v43 = vld [vmem:[%s1415_s1 + $0x108] sm:$0xf0]  ;;  %v230_v46 = vld [vmem:[%s1416_s2] sm:$0x3] }
  0x32   : > { %600 = vmatpush.bf16.msrb.mxu0 %v844_v60  ;;  %v983_v42 = vld [vmem:[%s1415_s1 + $0x104] sm:$0xf]  ;;  %v232_v47 = vperm.slane %v230_v46, 0 }
  0x33   : > { %590 = vmatpush.bf16.msrb.mxu3 %v748_v59  ;;  %614 = vmatpush.bf16.msrb.mxu1 %v908_v0  ;;  %v860_v45 = vor.u32 %v983_v42, %v857_v43  ;;  %v233_v0 = vperm.slane %v230_v46, 1 }
  0x35   : > { %633 = vmatpush.bf16.msrb.mxu2 %v932_v6 }
  0x36   : > { %601 = vmatpush.bf16.msrb.mxu0 %v836_v8 }
  0x37   : > { %591 = vmatpush.bf16.msrb.mxu3 %v740_v7  ;;  %615 = vmatpush.bf16.msrb.mxu1 %v900_v12 }
  0x39   : > { %634 = vmatpush.bf16.msrb.mxu2 %v924_v18 }
  0x3a   : > { %602 = vmatpush.bf16.msrb.mxu0 %v828_v20 }
  0x3b   : > { %592 = vmatpush.bf16.msrb.mxu3 %v732_v19  ;;  %616 = vmatpush.bf16.msrb.mxu1 %v892_v21 }
  0x3e   : > { %593 = vmatmul.bf16.vlgmr.msrb.gmra.mxu3 %v1278_v50  ;;  %603 = vmatpush.bf16.msrb.mxu0 %v820_v26 }
  0x3f   : > { %617 = vmatpush.bf16.msrb.mxu1 %v884_v27 }
  0x40   : > { %942 = vmatmul.msk.bf16.vlgmr.msrb.gmra.mxu2 %vm525_vm0, %v1265_v35  ;;  %v793_v35 = vld [vmem:[%s1415_s1 + $0x88] sm:$0xf0] }
  0x41   : > { %v796_v44 = vor.u32 %v967_v41, %v793_v35 }
  0x42   : > { %604 = vmatpush.bf16.msrb.mxu0 %v812_v32 }
  0x43   : > { %618 = vmatpush.bf16.msrb.mxu1 %v876_v33 }
  0x46   : > { %605 = vmatpush.bf16.msrb.mxu0 %v804_v39 }
  0x47   : > { %619 = vmatpush.bf16.msrb.mxu1 %v868_v40 }
  0x4a   : > { %606 = vmatpush.bf16.msrb.mxu0 %v796_v44 }
  0x4b   : > { %620 = vmatpush.bf16.msrb.mxu1 %v860_v45 }
  0x4d   : > { %607 = vmatmul.bf16.vlgmr.msrb.gmra.mxu0 %v1297_v57 }
  0x4e   : > { %621 = vmatmul.bf16.vlgmr.msrb.gmra.mxu1 %v1289_v54 }
  0xa8   : > { %v580_v51 = vpop.f32.mrf.mxu3 }
  0xaa   : > { %v538_v48 = vpop.f32.mrf.mxu0 }
  0xab   : > { %v539_v49 = vadd.f32 %v538_v48, %v232_v47  ;;  %v552_v50 = vpop.f32.mrf.mxu1 }
  0xad   : > { %v553_v52 = vadd.f32 %v552_v50, %v539_v49 }
  0xb0   : > { %v582_v60 = vpop.f32.mrf.mxu3 }
  0xb2   : > { %v540_v56 = vpop.f32.mrf.mxu0 }
  0xb3   : > { %v566_v53 = vpop.f32.mrf.mxu2  ;;  %v541_v57 = vadd.f32 %v540_v56, %v232_v47  ;;  %v554_v54 = vpop.f32.mrf.mxu1 }
  0xb4   : > { %v567_v55 = vadd.f32 %v566_v53, %v553_v52 }
  0xb5   : > { %v555_v59 = vadd.f32 %v554_v54, %v541_v57 }
  0xb6   : > { %v581_v58 = vadd.f32 %v580_v51, %v567_v55 }
  0xb8   : > { %641 = vst [vmem:[%s170_s17] sm:$0xff] %v581_v58 }
  0xbb   : > { %v568_v61 = vpop.f32.mrf.mxu2 }
  0xbc   : > { %v569_v62 = vadd.f32 %v568_v61, %v555_v59 }
  0xbe   : > { %v583_v63 = vadd.f32 %v582_v60, %v569_v62 }
  0xc0   : > { %643 = vst [vmem:[%s170_s17 + $0x10] sm:$0xff] %v583_v63 }
  0xc1   : > { %v594_v1 = vpop.f32.mrf.mxu3 }
  0xc2   : > { %v595_v2 = vadd.f32 %v594_v1, %v233_v0 }
  0xc3   : > { %v636_v6 = vpop.f32.mrf.mxu2 }
  0xc9   : > { %v596_v8 = vpop.f32.mrf.mxu3 }
  0xca   : > { %v608_v3 = vpop.f32.mrf.mxu0  ;;  %v597_v10 = vadd.f32 %v596_v8, %v233_v0 }
  0xcb   : > { %v609_v4 = vadd.f32 %v608_v3, %v595_v2  ;;  %v622_v5 = vpop.f32.mrf.mxu1  ;;  %v638_v15 = vpop.f32.mrf.mxu2 }
  0xcd   : > { %v623_v7 = vadd.f32 %v622_v5, %v609_v4 }
  0xcf   : > { %v637_v9 = vadd.f32 %v636_v6, %v623_v7 }
  0xd1   : > { %642 = vst [vmem:[%s170_s17 + $0x8] sm:$0xff] %v637_v9 }
  0xd2   : > { %v610_v11 = vpop.f32.mrf.mxu0 }
  0xd3   : > { %v611_v12 = vadd.f32 %v610_v11, %v597_v10  ;;  %v624_v13 = vpop.f32.mrf.mxu1 }
  0xd5   : > { %v625_v14 = vadd.f32 %v624_v13, %v611_v12 }
  0xd7   : > { %v639_v16 = vadd.f32 %v638_v15, %v625_v14 }
  0xd9   : > { %644 = vst [vmem:[%s170_s17 + $0x18] sm:$0xff] %v639_v16 }
  0xda PF: > { %s13_s12 = sadd.s32 1, %s1019_s12  }
  0xdb   : > { %p10_p4 = scmp.ge.s32.totalorder %s13_s12, 4  }
  0xdd   :  { %12 = sbr.rel (!%p10_p4) target bundleno = 1 (0x1), region = 62 }

</bundles_post_ra>
